<compile_context>
chip_gen: v5e
topology: v5e:2x2
jax: 0.10.0
libtpu: 0.0.40
codegen_flags: <defaults>
</compile_context>

<pallas_src>
import functools

import jax
import jax.numpy as jnp
from jax.experimental import pallas as pl
from jax.experimental.pallas import tpu as pltpu

LANE = 128
SUBLANE = 8
ACC_ROWS = 8                      # one f32 vreg worth of accumulator rows
MIN_BLOCK_BYTES = 256 * 1024      # ~85% of HBM roofline already at this size


def _block_bytes_cap():
    # ~2 MiB per input block by default (2 inputs x 2 pipeline buffers fits
    # v5e's 16 MiB scoped-VMEM default with room to spare); ~4 MiB on v7x
    # where per-TC HBM bandwidth is ~2.5x v6e and the fixed ~0.35us grid-step
    # overhead would otherwise be a larger fraction of each step.
    cap = 2 << 20
    try:
        kind = jax.devices()[0].device_kind.lower()
        if "v7" in kind or "tpu7" in kind:
            cap = 4 << 20
    except Exception:
        pass
    return cap


def _focal_sum_kernel(x_ref, t_ref, o_ref, acc_ref, *, gamma, total_rows,
                      block_rows, steps_per_slice, mask_tail):
    i = pl.program_id(1)

    @pl.when(i == 0)
    def _():
        acc_ref[...] = jnp.zeros_like(acc_ref)

    # Stream native dtype, do math in f32.
    xv = x_ref[...].astype(jnp.float32)
    tv = t_ref[...].astype(jnp.float32)
    d = xv - tv
    se = d * d
    pt = jnp.exp(-se)          # the only transcendental on the fast paths
    m = 1.0 - pt               # in [0, 1]

    g2 = round(gamma * 2.0)
    if abs(gamma * 2.0 - g2) < 1e-9 and 0 <= g2 <= 16:
        # Integer / half-integer gamma fast path (default gamma=2.0, also
        # 0.5, 1.5, ...): repeated VPU multiplies (+ one EUP sqrt for the
        # half power) instead of exp(gamma*log(m)).  Lane-padded elements
        # (se == 0, m == 0) contribute exactly 0.
        gi, half = divmod(int(g2), 2)
        mod = None
        if gi:
            mod = m
            for _ in range(gi - 1):
                mod = mod * m
        if half:
            root = jnp.sqrt(m)
            mod = root if mod is None else mod * root
        loss = se if mod is None else mod * se
    else:
        # General gamma: mask se == 0 so pow(0, gamma) can never inject
        # inf/nan into the accumulator (where selects elementwise).
        loss = jnp.where(se > 0.0, jnp.power(m, gamma) * se, 0.0)

    if mask_tail:
        # Zero rows past the true row count.  Uses the UNCLAMPED logical block
        # index, so this also zeroes the duplicate block produced by the
        # clamped index_map on ragged grids.
        start = (pl.program_id(0) * steps_per_slice + i) * block_rows
        row = start + jax.lax.broadcasted_iota(jnp.int32, loss.shape, 0)
        loss = jnp.where(row < total_rows, loss, 0.0)

    # Block-local partial sums into a single-vreg accumulator.  The leading
    # axis sum is pure vreg-wise VPU adds (no XLU, no block-sized VMEM
    # load/store per step).
    acc_ref[...] += loss.reshape(-1, ACC_ROWS, LANE).sum(axis=0)

    @pl.when(i == pl.num_programs(1) - 1)
    def _():
        # One cheap (8,128) cross-sublane reduce per slice; lane-dense output.
        o_ref[...] = jnp.sum(acc_ref[...], axis=0, keepdims=True)


def focal_regression_loss(x, target, alpha=1.0, gamma=2.0, reduction="mean"):
    """Pallas TPU implementation of FocalRegressionLoss.forward."""
    assert x.shape == target.shape
    if reduction not in ("mean", "sum"):
        # TODO(synk): reduction='none' would need an elementwise-output kernel;
        # the module default ('mean') and 'sum' are implemented here.
        raise NotImplementedError("reduction='none' not implemented")
    gamma = float(gamma)   # must be static Python scalars (trace-time branch)
    alpha = float(alpha)

    n = x.size
    xf = x.reshape(-1)
    tf = target.reshape(-1)

    itemsize_x = jnp.dtype(x.dtype).itemsize
    itemsize_t = jnp.dtype(target.dtype).itemsize
    # Sublane granularity of the most tightly packed input dtype
    # (f32: 8, bf16: 16, int8/fp8: 32).
    sub = SUBLANE * max(1, 4 // max(1, min(itemsize_x, itemsize_t)))

    rows = pl.cdiv(n, LANE)
    pad = rows * LANE - n
    if pad:
        # Only for sizes not divisible by 128: pad by < 128 zeros so the flat
        # buffer can be viewed as (rows, 128).  128-aligned sizes (the
        # perf-relevant case) take the no-copy reshape below.
        # TODO(synk): a 1-D layout could avoid this copy for odd sizes too.
        xf = jnp.pad(xf, (0, pad))
        tf = jnp.pad(tf, (0, pad))
    x2 = xf.reshape(rows, LANE)
    t2 = tf.reshape(rows, LANE)

    # Byte-capped, dtype-aware block sizing.
    cap_bytes = _block_bytes_cap()
    bytes_per_row = LANE * max(itemsize_x, itemsize_t)
    max_block_rows = max(sub, cap_bytes // bytes_per_row // sub * sub)
    min_block_rows = max(sub, MIN_BLOCK_BYTES // bytes_per_row // sub * sub)

    # Aim for ~8 grid steps (>= 4 per TensorCore after a megacore split) so
    # the double-buffer pipeline overlaps DMA with compute, without dropping
    # below the ~256 KiB floor or exceeding the byte cap; never exceed the
    # data itself.
    block_rows = pl.cdiv(pl.cdiv(rows, 8), sub) * sub
    block_rows = max(min(block_rows, max_block_rows), min_block_rows)
    block_rows = min(block_rows, pl.cdiv(rows, sub) * sub)

    steps_total = pl.cdiv(rows, block_rows)
    # Megacore split (v7x) only when each slice gets >= 2 grid steps.
    num_slices = 2 if steps_total >= 4 else 1
    steps_per_slice = pl.cdiv(steps_total, num_slices)

    covered_rows = num_slices * steps_per_slice * block_rows
    mask_tail = covered_rows != rows
    last_block = steps_total - 1

    if num_slices * steps_per_slice > steps_total:
        # Ragged grid: clamp so no DMA starts fully out of bounds; the
        # in-kernel row mask zeroes the duplicated block's contribution.
        def in_map(s, i):
            return (jnp.minimum(s * steps_per_slice + i, last_block), 0)
    else:
        def in_map(s, i):
            return (s * steps_per_slice + i, 0)

    # 2 double-buffered inputs per step, with ~2x headroom; clamped to a range
    # that is safe on every generation (v5e scoped default 16 MiB, v7x
    # physical 64 MiB).
    block_bytes = block_rows * LANE * (itemsize_x + itemsize_t)
    vmem_limit = int(min(max(4 * block_bytes, 16 << 20), 40 << 20))

    kernel = functools.partial(
        _focal_sum_kernel, gamma=gamma, total_rows=rows,
        block_rows=block_rows, steps_per_slice=steps_per_slice,
        mask_tail=mask_tail)

    partials = pl.pallas_call(
        kernel,
        out_shape=jax.ShapeDtypeStruct((num_slices, LANE), jnp.float32),
        grid_spec=pltpu.PrefetchScalarGridSpec(
            num_scalar_prefetch=0,
            grid=(num_slices, steps_per_slice),
            in_specs=[
                pl.BlockSpec((block_rows, LANE), in_map),
                pl.BlockSpec((block_rows, LANE), in_map),
            ],
            out_specs=pl.BlockSpec((1, LANE), lambda s, i: (s, 0)),
            scratch_shapes=[pltpu.VMEM((ACC_ROWS, LANE), jnp.float32)],
        ),
        compiler_params=pltpu.CompilerParams(
            dimension_semantics=("parallel", "arbitrary"),
            vmem_limit_bytes=vmem_limit),
    )(x2, t2)

    # Alpha applied once to the final scalar (hoisted out of the kernel).
    total = jnp.float32(alpha) * jnp.sum(partials)
    if reduction == "mean":
        return total / jnp.float32(n)
    return total


def _reference(x, target, alpha=1.0, gamma=2.0):
    xf = x.astype(jnp.float32)
    tf = target.astype(jnp.float32)
    se = (xf - tf) ** 2
    pt = jnp.exp(-se)
    loss = alpha * (1.0 - pt) ** gamma * se
    return loss.mean()


if __name__ == "__main__":
    key = jax.random.PRNGKey(0)

    # 1) Default config, small NCHW regression maps (module's typical use).
    k1, k2 = jax.random.split(key)
    x = jax.random.normal(k1, (2, 4, 16, 16), dtype=jnp.float32)
    t = jax.random.normal(k2, (2, 4, 16, 16), dtype=jnp.float32)
    out = jax.block_until_ready(
        focal_regression_loss(x, t, alpha=1.0, gamma=2.0, reduction="mean"))
    ref = _reference(x, t, 1.0, 2.0)
    assert jnp.allclose(out, ref, rtol=1e-4, atol=1e-6), (out, ref)

    # 2) Ragged size + half-integer gamma (lane padding + sqrt fast path +
    #    tail-row masking of a partial block).
    k3, k4 = jax.random.split(k1)
    x2 = jax.random.normal(k3, (3, 5, 17), dtype=jnp.float32)
    t2 = jax.random.normal(k4, (3, 5, 17), dtype=jnp.float32)
    out2 = jax.block_until_ready(
        focal_regression_loss(x2, t2, alpha=0.25, gamma=1.5))
    ref2 = _reference(x2, t2, 0.25, 1.5)
    assert jnp.allclose(out2, ref2, rtol=1e-4, atol=1e-6), (out2, ref2)

    # 3) Moderate f32 input: multi-step grid, megacore slice split, ragged
    #    grid (clamped index_map + duplicate-block masking), no pad copy.
    k5, k6 = jax.random.split(k3)
    x3 = jax.random.normal(k5, (8, 16, 56, 56), dtype=jnp.float32)
    t3 = jax.random.normal(k6, (8, 16, 56, 56), dtype=jnp.float32)
    out3 = jax.block_until_ready(
        focal_regression_loss(x3, t3, alpha=1.0, gamma=2.0))
    ref3 = _reference(x3, t3, 1.0, 2.0)
    assert jnp.allclose(out3, ref3, rtol=1e-4, atol=1e-6), (out3, ref3)

    # 4) bf16 native-dtype streaming + general (non half-integer) gamma path.
    k7, k8 = jax.random.split(k5)
    x4 = jax.random.normal(k7, (2, 8, 32, 32), dtype=jnp.bfloat16)
    t4 = jax.random.normal(k8, (2, 8, 32, 32), dtype=jnp.bfloat16)
    out4 = jax.block_until_ready(
        focal_regression_loss(x4, t4, alpha=0.5, gamma=1.7, reduction="sum"))
    ref4 = _reference(x4, t4, 0.5, 1.7) * x4.size
    assert jnp.allclose(out4, ref4, rtol=1e-3, atol=1e-5), (out4, ref4)

    print("KERNEL_OK")
</pallas_src>

<mosaic_0001>
module attributes {stable_mosaic.version = 11 : i64} {
  func.func @_focal_sum_kernel(%arg0: i32, %arg1: i32, %arg2: memref<16x128xf32, #tpu.memory_space<vmem>>, %arg3: memref<16x128xf32, #tpu.memory_space<vmem>>, %arg4: memref<1x128xf32, #tpu.memory_space<vmem>>, %arg5: memref<8x128xf32, #tpu.memory_space<vmem>>) attributes {dimension_semantics = [#tpu.dimension_semantics<parallel>, #tpu.dimension_semantics<arbitrary>], iteration_bounds = array<i64: 1, 1>, scalar_prefetch = 0 : i64, scratch_operands = 1 : i64, tpu.core_type = #tpu.core_type<tc>, window_params = [{transform_indices = @transform_0, window_bounds = array<i64: 16, 128>}, {transform_indices = @transform_1, window_bounds = array<i64: 16, 128>}, {transform_indices = @transform_2, window_bounds = array<i64: 1, 128>}]} {
    %c0_i32 = arith.constant 0 : i32
    %0 = arith.cmpi eq, %arg1, %c0_i32 : i32
    %1 = arith.extui %0 : i1 to i32
    %c0_i32_0 = arith.constant 0 : i32
    %2 = arith.cmpi ne, %1, %c0_i32_0 : i32
    scf.if %2 {
      %cst_12 = arith.constant 0.000000e+00 : f32
      %22 = vector.broadcast %cst_12 : f32 to vector<8x128xf32>
      %c0_13 = arith.constant 0 : index
      %c0_14 = arith.constant 0 : index
      %23 = vector.load %arg5[%c0_13, %c0_14] : memref<8x128xf32, #tpu.memory_space<vmem>>, vector<8x128xf32>
      tpu.vector_store %arg5[%c0_13, %c0_14], %22 {strides = array<i32>} : memref<8x128xf32, #tpu.memory_space<vmem>>, vector<8x128xf32>,
    } else {
    }
    %c0 = arith.constant 0 : index
    %c0_1 = arith.constant 0 : index
    %3 = vector.load %arg2[%c0, %c0_1] : memref<16x128xf32, #tpu.memory_space<vmem>>, vector<16x128xf32>
    %c0_2 = arith.constant 0 : index
    %c0_3 = arith.constant 0 : index
    %4 = vector.load %arg3[%c0_2, %c0_3] : memref<16x128xf32, #tpu.memory_space<vmem>>, vector<16x128xf32>
    %5 = arith.subf %3, %4 : vector<16x128xf32>
    %6 = arith.mulf %5, %5 : vector<16x128xf32>
    %cst = arith.constant 0.000000e+00 : f32
    %7 = vector.broadcast %cst : f32 to vector<16x128xf32>
    %8 = arith.subf %7, %6 : vector<16x128xf32>
    %9 = math.exp %8 : vector<16x128xf32>
    %cst_4 = arith.constant 1.000000e+00 : f32
    %10 = vector.broadcast %cst_4 : f32 to vector<16x128xf32>
    %11 = arith.subf %10, %9 : vector<16x128xf32>
    %12 = arith.mulf %11, %11 : vector<16x128xf32>
    %13 = arith.mulf %12, %6 : vector<16x128xf32>
    %c0_5 = arith.constant 0 : index
    %c0_6 = arith.constant 0 : index
    %14 = vector.load %arg5[%c0_5, %c0_6] : memref<8x128xf32, #tpu.memory_space<vmem>>, vector<8x128xf32>
    %15 = vector.shape_cast %13 : vector<16x128xf32> to vector<2x8x128xf32>
    %cst_7 = arith.constant dense<0.000000e+00> : vector<8x128xf32>
    %16 = vector.multi_reduction <add>, %15, %cst_7 [0] : vector<2x8x128xf32> to vector<8x128xf32>
    %17 = arith.addf %14, %16 : vector<8x128xf32>
    %c0_8 = arith.constant 0 : index
    %c0_9 = arith.constant 0 : index
    %18 = vector.load %arg5[%c0_8, %c0_9] : memref<8x128xf32, #tpu.memory_space<vmem>>, vector<8x128xf32>
    tpu.vector_store %arg5[%c0_8, %c0_9], %17 {strides = array<i32>} : memref<8x128xf32, #tpu.memory_space<vmem>>, vector<8x128xf32>,
    %c0_i32_10 = arith.constant 0 : i32
    %19 = arith.cmpi eq, %arg1, %c0_i32_10 : i32
    %20 = arith.extui %19 : i1 to i32
    %c0_i32_11 = arith.constant 0 : i32
    %21 = arith.cmpi ne, %20, %c0_i32_11 : i32
    scf.if %21 {
      %c0_12 = arith.constant 0 : index
      %c0_13 = arith.constant 0 : index
      %22 = vector.load %arg5[%c0_12, %c0_13] : memref<8x128xf32, #tpu.memory_space<vmem>>, vector<8x128xf32>
      %cst_14 = arith.constant dense<0.000000e+00> : vector<128xf32>
      %23 = vector.multi_reduction <add>, %22, %cst_14 [0] : vector<8x128xf32> to vector<128xf32>
      %24 = vector.shape_cast %23 : vector<128xf32> to vector<1x128xf32>
      %c0_15 = arith.constant 0 : index
      %c0_16 = arith.constant 0 : index
      %25 = vector.load %arg4[%c0_15, %c0_16] : memref<1x128xf32, #tpu.memory_space<vmem>>, vector<1x128xf32>
      tpu.vector_store %arg4[%c0_15, %c0_16], %24 {strides = array<i32>} : memref<1x128xf32, #tpu.memory_space<vmem>>, vector<1x128xf32>,
    } else {
    }
    return
  }
  func.func @transform_0(%arg0: i32, %arg1: i32) -> (i32, i32) {
    %c1_i32 = arith.constant 1 : i32
    %0 = arith.muli %arg0, %c1_i32 : i32
    %1 = arith.addi %0, %arg1 : i32
    %c0_i32 = arith.constant 0 : i32
    %c0_i32_0 = arith.constant 0 : i32
    return %1, %c0_i32 : i32, i32
  }
  func.func @transform_1(%arg0: i32, %arg1: i32) -> (i32, i32) {
    %c1_i32 = arith.constant 1 : i32
    %0 = arith.muli %arg0, %c1_i32 : i32
    %1 = arith.addi %0, %arg1 : i32
    %c0_i32 = arith.constant 0 : i32
    %c0_i32_0 = arith.constant 0 : i32
    return %1, %c0_i32 : i32, i32
  }
  func.func @transform_2(%arg0: i32, %arg1: i32) -> (i32, i32) {
    %c0_i32 = arith.constant 0 : i32
    %c0_i32_0 = arith.constant 0 : i32
    return %arg0, %c0_i32 : i32, i32
  }
}

</mosaic_0001>

<bundles_post_ra>
// kernel: tpu_custom_call.1
= control target key start
LH: loop header
LB: loop body
LE: loop exit
PB: predicated region body
PF: predicated region fallthrough
CT: control target
= control target key end

     0   :  { %7 = vsyncpa [#allocation4], 0  ;;  %s230_s0 = inlined_call_operand.hbm [shape: f32[16,128], index: 0, kind: input, shape index: {}]   ;;  %s231_s1 = inlined_call_operand.hbm [shape: f32[16,128], index: 1, kind: input, shape index: {}]   ;;  %s232_s2 = inlined_call_operand.hbm [shape: f32[1,128], index: 2, kind: output, shape index: {}]  }
   0x1   :  { %8 = vsyncpa [#allocation7], 0 }
   0x2   :  { %9 = vsyncpa [#allocation5], 0  ;;  %s18_s11 = sshll.u32 %s230_s0, 4  ;;  %s201_s12 = smov [#allocation3]   ;;  %s19_s11 = int_to_ptr.hbm [resolvable:$true] %s18_s11 }
   0x3   :  { %s20_s13 = sshll.u32 %s201_s12, 4  ;;  %s35_s16 = sshll.u32 %s231_s1, 4  ;;  %s21_s13 = int_to_ptr.vmem [resolvable:$true] %s20_s13  ;;  %s36_s16 = int_to_ptr.hbm [resolvable:$true] %s35_s16 }
   0x4   :  { %s202_s17 = smov 128   ;;  %s203_s18 = smov 8  }
   0x5   :  { %26 = dma.hbm_to_vmem [thread:$0]  %s19_s11, 256, %s21_s13, [#allocation4], %s202_s17, %s202_s17, %s203_s18  }
   0x6   :  { %s204_s19 = smov [#allocation6]  }
   0x7   :  { %s37_s20 = sshll.u32 %s204_s19, 4  ;;  %s38_s20 = int_to_ptr.vmem [resolvable:$true] %s37_s20 }
   0x8   :  { %43 = dma.hbm_to_vmem [thread:$0]  %s36_s16, 256, %s38_s20, [#allocation7], %s202_s17, %s202_s17, %s203_s18  }
   0x9   :  { %195 = dma.done.wait [#allocation4], 256  }
   0xa   :  { %196 = vsyncadd [#allocation4], 4294967040 }
   0xb   :  { %197 = dma.done.wait [#allocation7], 256  }
   0xc   :  { %198 = vsyncadd [#allocation7], 4294967040  ;;  %v61_v0 = vld [vmem:[#allocation3] sm:$0xff]  ;;  %v62_v1 = vld [vmem:[#allocation3 + $0x8] sm:$0xff]  ;;  %s205_s0 = smov [#allocation8]   ;;  %s103_s23 = sshll.u32 %s232_s2, 4  ;;  %s104_s23 = int_to_ptr.hbm [resolvable:$true] %s103_s23 }
   0xd   :  { %v63_v2 = vld [vmem:[#allocation6] sm:$0xff]  ;;  %v64_v3 = vld [vmem:[#allocation6 + $0x8] sm:$0xff]  ;;  %s101_s1 = sshll.u32 %s205_s0, 4  ;;  %s102_s1 = int_to_ptr.vmem [resolvable:$true] %s101_s1 }
   0xe   :  { %v65_v4 = vsub.f32 %v61_v0, %v63_v2  ;;  %v66_v5 = vsub.f32 %v62_v1, %v64_v3 }
  0x10   :  { %v67_v6 = vmul.f32 %v65_v4, %v65_v4  ;;  %v68_v7 = vmul.f32 %v66_v5, %v66_v5 }
  0x12   :  { %v69_v8 = vsub.f32 0.0, %v67_v6  ;;  %v70_v9 = vsub.f32 0.0, %v68_v7 }
  0x14   :  { %v71_v10 = vmul.f32 1.442695, %v69_v8  ;;  %v73_v11 = vmul.f32 1.442695, %v70_v9 }
  0x16   :  { %119 = vpow2.f32 %v71_v10 }
  0x17   :  { %121 = vpow2.f32 %v73_v11 }
  0x1c   :  { %v120_v12 = vpop.eup %119 }
  0x1d   :  { %v122_v13 = vpop.eup %121  ;;  %v75_v14 = vsub.f32 1.0, %v120_v12 }
  0x1e   :  { %v76_v15 = vsub.f32 1.0, %v122_v13 }
  0x1f   :  { %v77_v16 = vmul.f32 %v75_v14, %v75_v14 }
  0x20   :  { %v78_v17 = vmul.f32 %v76_v15, %v76_v15 }
  0x21   :  { %v79_v18 = vmul.f32 %v77_v16, %v67_v6 }
  0x22   :  { %v80_v19 = vmul.f32 %v78_v17, %v68_v7 }
  0x24   :  { %v82_v20 = vadd.f32 %v80_v19, %v79_v18 }
  0x26   :  { %v89_v21 = vrot.slane %v82_v20, 4 }
  0x28   :  { %v90_v22 = vadd.f32 %v89_v21, %v82_v20 }
  0x2a   :  { %v91_v23 = vrot.slane %v90_v22, 2 }
  0x2c   :  { %v92_v24 = vadd.f32 %v91_v23, %v90_v22 }
  0x2e   :  { %v93_v25 = vrot.slane %v92_v24, 1 }
  0x30   :  { %v94_v26 = vadd.f32 %v93_v25, %v92_v24 }
  0x32   :  { %95 = vst [vmem:[#allocation8] sm:$0x1] %v94_v26 }
  0x33   :  { %106 = dma.vmem_to_hbm [thread:$0]  %s102_s1, 16, %s104_s23, [#allocation5]  }
  0x34   :  { %199 = dma.done.wait [#allocation5], 16  }
  0x35   :  { %200 = vsyncadd [#allocation5], 4294967280 }
  0x36   :  { %111 = vsyncpa [#allocation4], 1 }
  0x37   :  { %112 = vsyncpa [#allocation7], 1 }
  0x38   :  { %113 = vsyncpa [#allocation5], 1 }

</bundles_post_ra>
